<compile_context>
chip_gen: v7x
topology: tpu7x:2x2x1
jax: 0.10.0
libtpu: 0.0.40
codegen_flags: <defaults>
</compile_context>

<pallas_src>
import functools

import jax
import jax.numpy as jnp
import numpy as np
from jax.experimental import pallas as pl
from jax.experimental.pallas import tpu as pltpu


def _focal_loss_kernel(x_ref, lbl_ref, out_ref, *, alpha, gamma, valid_rows,
                       need_row_mask):
    """One (batch, row-tile) grid step.

    x_ref   : (C, TILE_R, 128) logits (f32 or bf16)
    lbl_ref : (TILE_R, 128)    integer labels (-1 == padding)
    out_ref : (1, 1)           per-(b, j) partial loss sum
    """
    num_classes = len(alpha)

    xs = [x_ref[c].astype(jnp.float32) for c in range(num_classes)]
    lbl = lbl_ref[...]

    # Class max / sum as unrolled elementwise ops (C is tiny and static).
    m = xs[0]
    for c in range(1, num_classes):
        m = jnp.maximum(m, xs[c])
    zs = [x - m for x in xs]
    es = [jnp.exp(z) for z in zs]
    s = es[0]
    for c in range(1, num_classes):
        s = s + es[c]
    log_s = jnp.log(s)
    inv_s = pl.reciprocal(s, approx=False)   # approx=True is a valid perf flip on v7x

    # Fused label + alpha gather:
    #   a_nll = alpha[label] * (-log p_label),  e_t = exp(z_label)
    # Padding label (-1) matches no class -> both are exactly 0.
    a_nll = jnp.zeros_like(m)
    e_t = jnp.zeros_like(m)
    for c in range(num_classes):
        match = lbl == c
        a_nll = a_nll + jnp.where(match, float(alpha[c]) * (log_s - zs[c]), 0.0)
        e_t = e_t + jnp.where(match, es[c], 0.0)

    p_t = e_t * inv_s                       # exp(z_t) / sum(exp(z)) — no extra exp
    one_minus_p = 1.0 - p_t                 # padding: p_t = 0 -> w = 1, a_nll = 0 -> 0
    g = float(gamma)
    if g == int(g) and 0 <= int(g) <= 8:
        w = jnp.ones_like(one_minus_p)
        for _ in range(int(g)):             # explicit multiplies, no jnp.power
            w = w * one_minus_p
    else:
        # Clamp: rounding can push p_t marginally above 1; negative base under a
        # fractional power would produce NaN.
        w = jnp.power(jnp.maximum(one_minus_p, 0.0), g)

    contrib = w * a_nll                     # per-pixel focal loss term

    if need_row_mask:
        # Ragged last row-tile: rows >= valid_rows were read out of bounds
        # (garbage, possibly NaN/Inf).  The select discards them safely.
        tile_r = contrib.shape[0]
        row = (jax.lax.broadcasted_iota(jnp.int32, contrib.shape, 0)
               + pl.program_id(1) * tile_r)
        contrib = jnp.where(row < valid_rows, contrib, 0.0)

    # Two-stage reduce: sublanes (VPU add tree), then lanes (XLU) -> (1, 1).
    col = jnp.sum(contrib, axis=0, keepdims=True)        # (1, 128)
    out_ref[...] = jnp.sum(col, axis=1, keepdims=True)   # (1, 1)


def focal_loss_pallas(preds, labels, alpha_vec, gamma=2.0, size_average=True,
                      tile_rows=1024):
    """preds: (B, C, H, W) float; labels: (B, H, W) signed int; alpha_vec: (C,)."""
    B, C, H, W = preds.shape
    HW = H * W
    N = B * HW

    # Keep f32/bf16 logits as-is (no wrapper-side cast == no extra HBM pass);
    # anything else is cast to f32.
    if preds.dtype.name not in ("float32", "bfloat16"):
        preds = preds.astype(jnp.float32)
    # Keep small signed-int labels in their native dtype (int8/int16/int32).
    if labels.dtype.kind != "i" or labels.dtype.itemsize > 4:
        labels = labels.astype(jnp.int32)

    x = preds.reshape(B, C, HW)     # free reshape (contiguous), no NCHW->NHWC transpose
    lbl = labels.reshape(B, HW)

    # 128-align the spatial dim.  This only copies when HW % 128 != 0 (a <=127
    # column pad); lane-aligned images incur no extra HBM pass at all.
    pad = (-HW) % 128
    if pad:
        x = jnp.pad(x, ((0, 0), (0, 0), (0, pad)))
        lbl = jnp.pad(lbl, ((0, 0), (0, pad)), constant_values=-1)
    R = (HW + pad) // 128
    x = x.reshape(B, C, R, 128)     # spatial dim spread across sublanes AND lanes
    lbl = lbl.reshape(B, R, 128)

    # Row tile: tile_rows*128 pixels per step (~2 MiB of f32 logits at 1024).
    # Multiple of 32 covers f32/bf16 logit and int32/int16/int8 label tilings.
    tile_r = max(32, (int(tile_rows) // 32) * 32)
    if tile_r >= R:
        tile_r = R                  # full second-to-last dim is always a legal block
        n_tiles = 1
        need_row_mask = False
    else:
        n_tiles = pl.cdiv(R, tile_r)
        need_row_mask = (R % tile_r) != 0

    alpha_host = tuple(float(a) for a in np.asarray(alpha_vec).reshape(-1))
    assert len(alpha_host) == C

    kernel = functools.partial(_focal_loss_kernel, alpha=alpha_host,
                               gamma=float(gamma), valid_rows=R,
                               need_row_mask=need_row_mask)

    partials = pl.pallas_call(
        kernel,
        out_shape=jax.ShapeDtypeStruct((B, n_tiles, 1, 1), jnp.float32),
        grid_spec=pltpu.PrefetchScalarGridSpec(
            num_scalar_prefetch=0,
            grid=(B, n_tiles),
            in_specs=[
                # logits: squeezed batch, full class dim, (TILE_R, 128) spatial tile
                pl.BlockSpec((None, C, tile_r, 128), lambda b, j: (b, 0, j, 0)),
                # labels: squeezed batch, (TILE_R, 128) spatial tile
                pl.BlockSpec((None, tile_r, 128), lambda b, j: (b, j, 0)),
            ],
            # per-(b, j) scalar partial; last two block dims equal the full dims
            out_specs=pl.BlockSpec((None, None, 1, 1), lambda b, j: (b, j, 0, 0)),
        ),
        compiler_params=pltpu.CompilerParams(
            # No carried accumulator -> both axes truly parallel (v7x 2-TC sharding
            # even at B=1; harmless on single-TC v5e/v6e).
            dimension_semantics=("parallel", "parallel"),
            vmem_limit_bytes=32 * 1024 * 1024),
    )(x, lbl)

    total = jnp.sum(partials)
    if size_average:
        total = total / jnp.float32(N)
    return total


def focal_loss_ref(preds, labels, alpha_vec, gamma=2.0, size_average=True):
    """Pure-JAX reference mirroring the PyTorch forward."""
    B, C, H, W = preds.shape
    x = jnp.transpose(preds, (0, 2, 3, 1)).reshape(-1, C).astype(jnp.float32)
    lbl = labels.reshape(-1)
    logp = jax.nn.log_softmax(x, axis=1)
    logp_t = jnp.take_along_axis(logp, lbl[:, None], axis=1)[:, 0]
    p_t = jnp.exp(logp_t)
    alpha_t = jnp.asarray(alpha_vec)[lbl]
    loss = -alpha_t * jnp.power(1.0 - p_t, gamma) * logp_t
    return jnp.mean(loss) if size_average else jnp.sum(loss)


if __name__ == "__main__":
    # Module config (Focal_loss defaults: alpha=0.25, gamma=2, num_classes=3);
    # alpha vector as built in __init__: alpha[0]=alpha, alpha[1:]=1-alpha.
    num_classes = 3
    alpha_scalar = 0.25
    alpha_vec = np.zeros((num_classes,), dtype=np.float32)
    alpha_vec[0] = alpha_scalar
    alpha_vec[1:] = 1.0 - alpha_scalar
    alpha_vec = jnp.asarray(alpha_vec)

    key = jax.random.PRNGKey(0)

    def run_case(key, B, H, W, gamma, size_average, tile_rows=1024,
                 logits_dtype=jnp.float32, rtol=2e-5, atol=2e-5):
        k1, k2 = jax.random.split(key)
        preds = jax.random.normal(k1, (B, num_classes, H, W),
                                  dtype=jnp.float32).astype(logits_dtype)
        labels = jax.random.randint(k2, (B, H, W), 0, num_classes,
                                    dtype=jnp.int32)
        out = focal_loss_pallas(preds, labels, alpha_vec, gamma=gamma,
                                size_average=size_average, tile_rows=tile_rows)
        out = jax.block_until_ready(out)
        ref = focal_loss_ref(preds.astype(jnp.float32), labels, alpha_vec,
                             gamma=gamma, size_average=size_average)
        np.testing.assert_allclose(np.asarray(out), np.asarray(ref),
                                   rtol=rtol, atol=atol)

    k1, k2, k3, k4 = jax.random.split(key, 4)

    # 1) HW multiple of 128 (no pad path), integer gamma, mean reduction.
    run_case(k1, B=2, H=16, W=16, gamma=2.0, size_average=True)

    # 2) HW NOT a multiple of 128 (128-alignment pad path), fractional gamma
    #    (power + clamp path), sum reduction.
    run_case(k2, B=2, H=16, W=20, gamma=1.7, size_average=False)

    # 3) Multi-tile ragged grid with in-kernel row mask (R=36, TILE_R=32), B=1
    #    to exercise the fully-parallel (b, j) sharding path.
    run_case(k3, B=1, H=64, W=72, gamma=2.0, size_average=True, tile_rows=32)

    # 4) bf16 logits passed straight through the DMA, upcast in-kernel.
    run_case(k4, B=2, H=16, W=16, gamma=2.0, size_average=True,
             logits_dtype=jnp.bfloat16)

    print("KERNEL_OK")
</pallas_src>

<mosaic_0001>
module attributes {stable_mosaic.version = 11 : i64} {
  func.func @_focal_loss_kernel(%arg0: i32, %arg1: i32, %arg2: memref<1x3x2x128xf32, #tpu.memory_space<vmem>>, %arg3: memref<1x2x128xi32, #tpu.memory_space<vmem>>, %arg4: memref<1x1x1x1xf32, #tpu.memory_space<vmem>>) attributes {dimension_semantics = [#tpu.dimension_semantics<parallel>, #tpu.dimension_semantics<parallel>], iteration_bounds = array<i64: 2, 1>, scalar_prefetch = 0 : i64, scratch_operands = 0 : i64, tpu.core_type = #tpu.core_type<tc>, window_params = [{transform_indices = @transform_0, window_bounds = array<i64: 1, 3, 2, 128>}, {transform_indices = @transform_1, window_bounds = array<i64: 1, 2, 128>}, {transform_indices = @transform_2, window_bounds = array<i64: 1, 1, 1, 1>}]} {
    %c0 = arith.constant 0 : index
    %c0_0 = arith.constant 0 : index
    %c0_1 = arith.constant 0 : index
    %c0_2 = arith.constant 0 : index
    %0 = vector.load %arg2[%c0, %c0_0, %c0_1, %c0_2] : memref<1x3x2x128xf32, #tpu.memory_space<vmem>>, vector<1x1x2x128xf32>
    %1 = vector.shape_cast %0 : vector<1x1x2x128xf32> to vector<2x128xf32>
    %c0_3 = arith.constant 0 : index
    %c1 = arith.constant 1 : index
    %c0_4 = arith.constant 0 : index
    %c0_5 = arith.constant 0 : index
    %2 = vector.load %arg2[%c0_3, %c1, %c0_4, %c0_5] : memref<1x3x2x128xf32, #tpu.memory_space<vmem>>, vector<1x1x2x128xf32>
    %3 = vector.shape_cast %2 : vector<1x1x2x128xf32> to vector<2x128xf32>
    %c0_6 = arith.constant 0 : index
    %c2 = arith.constant 2 : index
    %c0_7 = arith.constant 0 : index
    %c0_8 = arith.constant 0 : index
    %4 = vector.load %arg2[%c0_6, %c2, %c0_7, %c0_8] : memref<1x3x2x128xf32, #tpu.memory_space<vmem>>, vector<1x1x2x128xf32>
    %5 = vector.shape_cast %4 : vector<1x1x2x128xf32> to vector<2x128xf32>
    %c0_9 = arith.constant 0 : index
    %c0_10 = arith.constant 0 : index
    %c0_11 = arith.constant 0 : index
    %6 = vector.load %arg3[%c0_9, %c0_10, %c0_11] : memref<1x2x128xi32, #tpu.memory_space<vmem>>, vector<1x2x128xi32>
    %7 = vector.shape_cast %6 : vector<1x2x128xi32> to vector<2x128xi32>
    %8 = arith.maximumf %1, %3 : vector<2x128xf32>
    %9 = arith.maximumf %8, %5 : vector<2x128xf32>
    %10 = arith.subf %1, %9 : vector<2x128xf32>
    %11 = arith.subf %3, %9 : vector<2x128xf32>
    %12 = arith.subf %5, %9 : vector<2x128xf32>
    %13 = math.exp %10 : vector<2x128xf32>
    %14 = math.exp %11 : vector<2x128xf32>
    %15 = math.exp %12 : vector<2x128xf32>
    %16 = arith.addf %13, %14 : vector<2x128xf32>
    %17 = arith.addf %16, %15 : vector<2x128xf32>
    %18 = math.log %17 : vector<2x128xf32>
    %19 = tpu.reciprocal %17 : vector<2x128xf32> -> vector<2x128xf32>
    %cst = arith.constant 0.000000e+00 : f32
    %20 = vector.broadcast %cst : f32 to vector<2x128xf32>
    %cst_12 = arith.constant 0.000000e+00 : f32
    %21 = vector.broadcast %cst_12 : f32 to vector<2x128xf32>
    %c0_i32 = arith.constant 0 : i32
    %22 = vector.broadcast %c0_i32 : i32 to vector<2x128xi32>
    %23 = arith.cmpi eq, %7, %22 : vector<2x128xi32>
    %24 = arith.subf %18, %10 : vector<2x128xf32>
    %cst_13 = arith.constant 2.500000e-01 : f32
    %25 = vector.broadcast %cst_13 : f32 to vector<2x128xf32>
    %26 = arith.mulf %25, %24 : vector<2x128xf32>
    %cst_14 = arith.constant 0.000000e+00 : f32
    %27 = vector.broadcast %cst_14 : f32 to vector<2x128xf32>
    %28 = arith.select %23, %26, %27 : vector<2x128xi1>, vector<2x128xf32>
    %29 = arith.addf %20, %28 : vector<2x128xf32>
    %cst_15 = arith.constant 0.000000e+00 : f32
    %30 = vector.broadcast %cst_15 : f32 to vector<2x128xf32>
    %31 = arith.select %23, %13, %30 : vector<2x128xi1>, vector<2x128xf32>
    %32 = arith.addf %21, %31 : vector<2x128xf32>
    %c1_i32 = arith.constant 1 : i32
    %33 = vector.broadcast %c1_i32 : i32 to vector<2x128xi32>
    %34 = arith.cmpi eq, %7, %33 : vector<2x128xi32>
    %35 = arith.subf %18, %11 : vector<2x128xf32>
    %cst_16 = arith.constant 7.500000e-01 : f32
    %36 = vector.broadcast %cst_16 : f32 to vector<2x128xf32>
    %37 = arith.mulf %36, %35 : vector<2x128xf32>
    %cst_17 = arith.constant 0.000000e+00 : f32
    %38 = vector.broadcast %cst_17 : f32 to vector<2x128xf32>
    %39 = arith.select %34, %37, %38 : vector<2x128xi1>, vector<2x128xf32>
    %40 = arith.addf %29, %39 : vector<2x128xf32>
    %cst_18 = arith.constant 0.000000e+00 : f32
    %41 = vector.broadcast %cst_18 : f32 to vector<2x128xf32>
    %42 = arith.select %34, %14, %41 : vector<2x128xi1>, vector<2x128xf32>
    %43 = arith.addf %32, %42 : vector<2x128xf32>
    %c2_i32 = arith.constant 2 : i32
    %44 = vector.broadcast %c2_i32 : i32 to vector<2x128xi32>
    %45 = arith.cmpi eq, %7, %44 : vector<2x128xi32>
    %46 = arith.subf %18, %12 : vector<2x128xf32>
    %cst_19 = arith.constant 7.500000e-01 : f32
    %47 = vector.broadcast %cst_19 : f32 to vector<2x128xf32>
    %48 = arith.mulf %47, %46 : vector<2x128xf32>
    %cst_20 = arith.constant 0.000000e+00 : f32
    %49 = vector.broadcast %cst_20 : f32 to vector<2x128xf32>
    %50 = arith.select %45, %48, %49 : vector<2x128xi1>, vector<2x128xf32>
    %51 = arith.addf %40, %50 : vector<2x128xf32>
    %cst_21 = arith.constant 0.000000e+00 : f32
    %52 = vector.broadcast %cst_21 : f32 to vector<2x128xf32>
    %53 = arith.select %45, %15, %52 : vector<2x128xi1>, vector<2x128xf32>
    %54 = arith.addf %43, %53 : vector<2x128xf32>
    %55 = arith.mulf %54, %19 : vector<2x128xf32>
    %cst_22 = arith.constant 1.000000e+00 : f32
    %56 = vector.broadcast %cst_22 : f32 to vector<2x128xf32>
    %57 = arith.subf %56, %55 : vector<2x128xf32>
    %cst_23 = arith.constant 1.000000e+00 : f32
    %58 = vector.broadcast %cst_23 : f32 to vector<2x128xf32>
    %59 = arith.mulf %58, %57 : vector<2x128xf32>
    %60 = arith.mulf %59, %57 : vector<2x128xf32>
    %61 = arith.mulf %60, %51 : vector<2x128xf32>
    %cst_24 = arith.constant dense<0.000000e+00> : vector<128xf32>
    %62 = vector.multi_reduction <add>, %61, %cst_24 [0] : vector<2x128xf32> to vector<128xf32>
    %63 = vector.shape_cast %62 : vector<128xf32> to vector<1x128xf32>
    %cst_25 = arith.constant dense<0.000000e+00> : vector<1xf32>
    %64 = vector.multi_reduction <add>, %63, %cst_25 [1] : vector<1x128xf32> to vector<1xf32>
    %65 = vector.shape_cast %64 : vector<1xf32> to vector<1x1xf32>
    %c0_26 = arith.constant 0 : index
    %c0_27 = arith.constant 0 : index
    %c0_28 = arith.constant 0 : index
    %c0_29 = arith.constant 0 : index
    %66 = vector.load %arg4[%c0_26, %c0_27, %c0_28, %c0_29] : memref<1x1x1x1xf32, #tpu.memory_space<vmem>>, vector<1x1x1x1xf32>
    %67 = vector.shape_cast %66 : vector<1x1x1x1xf32> to vector<1x1xf32>
    %68 = vector.shape_cast %65 : vector<1x1xf32> to vector<1x1x1x1xf32>
    tpu.vector_store %arg4[%c0_26, %c0_27, %c0_28, %c0_29], %68 {strides = array<i32>} : memref<1x1x1x1xf32, #tpu.memory_space<vmem>>, vector<1x1x1x1xf32>,
    return
  }
  func.func @transform_0(%arg0: i32, %arg1: i32) -> (i32, i32, i32, i32) {
    %c0_i32 = arith.constant 0 : i32
    %c0_i32_0 = arith.constant 0 : i32
    %c0_i32_1 = arith.constant 0 : i32
    return %arg0, %c0_i32, %arg1, %c0_i32_0 : i32, i32, i32, i32
  }
  func.func @transform_1(%arg0: i32, %arg1: i32) -> (i32, i32, i32) {
    %c0_i32 = arith.constant 0 : i32
    %c0_i32_0 = arith.constant 0 : i32
    return %arg0, %arg1, %c0_i32 : i32, i32, i32
  }
  func.func @transform_2(%arg0: i32, %arg1: i32) -> (i32, i32, i32, i32) {
    %c0_i32 = arith.constant 0 : i32
    %c0_i32_0 = arith.constant 0 : i32
    %c0_i32_1 = arith.constant 0 : i32
    return %arg0, %arg1, %c0_i32, %c0_i32_0 : i32, i32, i32, i32
  }
}

</mosaic_0001>

<bundles_post_ra>
// kernel: tpu_custom_call.1
= control target key start
LH: loop header
LB: loop body
LE: loop exit
PB: predicated region body
PF: predicated region fallthrough
CT: control target
= control target key end

     0   :  { %7 = vsyncpa [#allocation3], 0  ;;  %s772_s0 = inlined_call_operand.hbm [shape: f32[2,3,2,128], index: 0, kind: input, shape index: {}]   ;;  %s773_s1 = inlined_call_operand.hbm [shape: s32[2,2,128], index: 1, kind: input, shape index: {}]   ;;  %s774_s2 = inlined_call_operand.vmem [shape: f32[2,1,1,1], index: 2, kind: output, shape index: {}]  }
   0x1   :  { %9 = vsyncpa [#allocation3 + $0x1], 0 }
   0x2   :  { %10 = vsyncpa [#allocation5], 0 }
   0x3   :  { %12 = vsyncpa [#allocation5 + $0x1], 0  ;;  %s608_s9 = smov 0   ;;  %s610_s10 = smov 0  }
   0x4   :  { %s612_s11 = smov 0   ;;  %s614_s12 = smov 0  }
   0x5   :  { %s616_s13 = smov 0   ;;  %s618_s14 = smov 0  }
   0x6 LB: > { %s385_s15 = sadd.s32 4294967295, %s587_s14   ;;  %s30_s16 = sadd.s32 1, %s583_s13  ;;  %s587_s14 = sphi %s618_s14, %s18_s14   ;;  %s583_s13 = sphi %s616_s13, %s785_s13   ;;  %s579_s12 = sphi %s614_s12, %s784_s12   ;;  %s575_s11 = sphi %s612_s11, %s783_s11   ;;  %s571_s10 = sphi %s610_s10, %s782_s10   ;;  %s567_s9 = sphi %s608_s9, %s781_s9  }
   0x7   : > { %p32_p0 = scmp.ge.s32.totalorder %s30_s16, 2  ;;  %s39_s17 = sadd.s32 1, %s575_s11 }
   0x8   : > { %p46_p1 = scmp.ne.s32.totalorder %s575_s11, %s571_s10  ;;  %p47_p2 = scmp.eq.s32.totalorder %s587_s14, 0 }
   0x9   : > { %s787_s16 = smov (%p32_p0, %s30_s16), 0  ;;  %p52_p4 = scmp.ne.s32.totalorder %s571_s10, %s567_s9 }
   0xa   : > { %p48_p3 = por %p47_p2, %p46_p1  ;;  %s34_s18 = ssub.s32 %s583_s13, %s787_s16 }
   0xb   : > { %p53_p5 = scmp.eq.s32.totalorder %s385_s15, 0  ;;  %p37_p6 = scmp.eq.s32.totalorder %s34_s18, 0 }
   0xc   : > { %p412_p8 = scmp.lt.s32.totalorder %s587_s14, 2  ;;  %s656_s21 = sand.u32 1, %s575_s11  }
   0xd   : > { %p647_p7 = por %p53_p5, %p52_p4  ;;  %s399_s22 = smul.u32 96, %s583_s13 }
   0xe   : > { %s653_s20 = scalar_select %p37_p6, %s575_s11, %s39_s17  }
   0xf   : > { %s776_s19 = scalar_select %p647_p7, 1, 0 }
  0x10   : > { %s398_s23 = smul.u32 6, %s656_s21  ;;  %s663_s26 = scalar_lea.hbm %s772_s0, %s399_s22 }
  0x11   : > { %p665_p9 = pnand %p412_p8, %p48_p3  ;;  %s133_s30 = scalar_lea.sflag [#allocation3], %s656_s21 }
  0x12   : > { %s136_s28 = scalar_lea.vmem [#allocation2], %s398_s23  ;;  %s473_s3 = scalar_lea.hbm %s663_s26, 96 }
  0x13   : > { %s144_s29 = sshll.u32 %s136_s28, 4  ;;  %p474_p10 = scmp.ne.s32.totalorder %s663_s26, %s473_s3  ;;  %s669_s29 = int_to_ptr.vmem [resolvable:$true] %s144_s29 }
  0x14   : > { %p475_p11 = pneg %p665_p9  ;;  %s478_s6 = scalar_lea.hbm %s772_s0, 192 }
  0x15   : > { %p479_p0 = scmp.lt.u32.totalorder %s663_s26, %s772_s0  ;;  %p480_p1 = scmp.lt.u32.totalorder %s478_s6, %s473_s3 }
  0x16   : > { %p476_p12 = pnand %p475_p11, %p474_p10  ;;  %p482_p3 = scmp.lt.u32.totalorder %s473_s3, %s663_s26 }
  0x17   : > { %p481_p2 = por %p480_p1, %p479_p0 }
  0x18   : > { %p477_p13 = pneg %p476_p12 }
  0x19   : > { %p483_p4 = por %p482_p3, %p481_p2 }
  0x1b   : > { %p484_p5 = pnand %p483_p4, %p477_p13 }
  0x1d   : > { %487 = shalt.err (!%p484_p5)
}
  0x1e   : > { %s488_s9 = scalar_lea.vmem %s669_s29, 96  ;;  %s589_s15 = smov [#allocation2]  }
  0x1f   : > { %p489_p6 = scmp.ne.s32.totalorder %s669_s29, %s488_s9  ;;  %s493_s17 = sshll.u32 %s589_s15, 4  ;;  %s494_s17 = int_to_ptr.vmem [resolvable:$false] %s493_s17 }
  0x20   : > { %s495_s18 = scalar_lea.vmem %s494_s17, 192  ;;  %p496_p12 = scmp.lt.s32.totalorder %s669_s29, %s494_s17 }
  0x21   : > { %p491_p8 = pnand %p489_p6, %p475_p11  ;;  %p497_p0 = scmp.lt.s32.totalorder %s495_s18, %s488_s9 }
  0x23   : > { %p492_p10 = pneg %p491_p8  ;;  %p498_p1 = por %p497_p0, %p496_p12 }
  0x25   : > { %p499_p2 = pnand %p498_p1, %p492_p10 }
  0x27   : > { %502 = shalt.err (!%p499_p2)
}
  0x28   : > { %s590_s22 = smov 32   ;;  %s591_s23 = smov 2  }
  0x29   : > { %408 = dma.hbm_to_vmem [thread:$0]  (!%p665_p9), %s663_s26, 96, %s669_s29, %s133_s30, %s590_s22, %s590_s22, %s591_s23  }
  0x2a   : > { %p392_p13 = scmp.ge.s32.totalorder %s587_s14, 1  ;;  %p171_p3 = scmp.lt.s32.totalorder %s587_s14, 3 }
  0x2b   : > { %s390_s24 = sshll.u32 %s656_s21, 1  ;;  %s391_s28 = sshll.u32 %s583_s13, 5 }
  0x2c   : > { %p702_p4 = pnand %p392_p13, %p171_p3  ;;  %s158_s3 = scalar_lea.vmem [#allocation4], %s390_s24 }
  0x2d   : > { %s166_s4 = sshll.u32 %s158_s3, 4  ;;  %s710_s7 = scalar_lea.hbm %s773_s1, %s391_s28  ;;  %s167_s4 = int_to_ptr.vmem [resolvable:$true] %s166_s4 }
  0x2e   : > { %s778_s25 = scalar_select %p702_p4, 1, 0 }
  0x2f   : > { %s155_s26 = scalar_lea.sflag [#allocation5], %s656_s21  ;;  %s503_s29 = scalar_lea.hbm %s710_s7, 32 }
  0x30   : > { %p504_p5 = scmp.ne.s32.totalorder %s710_s7, %s503_s29  ;;  %s508_s9 = scalar_lea.hbm %s773_s1, 64 }
  0x31   : > { %p509_p10 = scmp.lt.u32.totalorder %s710_s7, %s773_s1  ;;  %p510_p12 = scmp.lt.u32.totalorder %s508_s9, %s503_s29 }
  0x32   : > { %p506_p6 = pnand %p504_p5, %p475_p11  ;;  %p512_p1 = scmp.lt.u32.totalorder %s503_s29, %s710_s7 }
  0x33   : > { %p511_p0 = por %p510_p12, %p509_p10 }
  0x34   : > { %p507_p8 = pneg %p506_p6 }
  0x35   : > { %p513_p2 = por %p512_p1, %p511_p0 }
  0x37   : > { %p514_p13 = pnand %p513_p2, %p507_p8 }
  0x39   : > { %517 = shalt.err (!%p514_p13)
}
  0x3a   : > { %s518_s21 = scalar_lea.vmem %s167_s4, 32  ;;  %s592_s18 = smov [#allocation4]  }
  0x3b   : > { %p519_p3 = scmp.ne.s32.totalorder %s167_s4, %s518_s21  ;;  %s523_s22 = sshll.u32 %s592_s18, 4  ;;  %s524_s22 = int_to_ptr.vmem [resolvable:$false] %s523_s22 }
  0x3c   : > { %s525_s23 = scalar_lea.vmem %s524_s22, 64  ;;  %p526_p7 = scmp.lt.s32.totalorder %s167_s4, %s524_s22 }
  0x3d   : > { %p521_p5 = pnand %p519_p3, %p475_p11  ;;  %p527_p4 = scmp.lt.s32.totalorder %s525_s23, %s518_s21 }
  0x3f   : > { %p522_p6 = pneg %p521_p5  ;;  %p528_p10 = por %p527_p4, %p526_p7 }
  0x41   : > { %p529_p12 = pnand %p528_p10, %p522_p6 }
  0x43   : > { %532 = shalt.err (!%p529_p12)
}
  0x44   : > { %411 = dma.hbm_to_vmem [thread:$0]  (!%p665_p9), %s710_s7, 32, %s167_s4, %s155_s26  }
  0x45   : > { %p779_p8 = scmp.ne.s32.totalorder %s778_s25, 0 }
  0x46   : > { %s177_s24 = sand.u32 (!%p779_p8), 1, %s571_s10   ;;  %p780_p11 = scmp.ne.s32.totalorder (!%p779_p8), %s776_s19, 0 }
  0x47   : > { %175 = sbr.rel (%p779_p8) target bundleno = 287 (0x11f), region = 28  ;;  %s178_s3 = scalar_lea.sflag (!%p779_p8), [#allocation3], %s177_s24 }
  0x48   : > { %s400_s28 = smul.u32 (!%p779_p8), 6, %s177_s24 }
  0x4a   : > { %s181_s5 = scalar_lea.vmem (!%p779_p8), [#allocation2], %s400_s28 }
  0x4e   : > { %558 = dma.done.wait (%p780_p11), %s178_s3, 96  }
  0x4f   : > { %560 = vsyncadd (%p780_p11), %s178_s3, 4294967200  ;;  %s393_s6 = sshll.u32 %s177_s24, 1  ;;  %s187_s29 = scalar_lea.sflag [#allocation5], %s177_s24 }
  0x50   : > { %s190_s27 = scalar_lea.vmem [#allocation4], %s393_s6 }
  0x51   : > { %562 = dma.done.wait (%p780_p11), %s187_s29, 32  }
  0x52   : > { %564 = vsyncadd (%p780_p11), %s187_s29, 4294967264  ;;  %v223_v0 = vld [vmem:[%s181_s5] sm:$0x3]  ;;  %v394_v1 = vld [vmem:[%s181_s5 + $0x2] sm:$0x3]  ;;  %vm270_vm3 = vcmask 1041408  }
  0x53   : > { %v395_v2 = vld [vmem:[%s181_s5 + $0x4] sm:$0x3]  ;;  %v229_v3 = vmax.f32 %v223_v0, %v394_v1  ;;  %v228_v13 = vld [vmem:[%s190_s27] sm:$0x3]  ;;  %p217_p7 = scmp.lt.s32.totalorder %s579_s12, 1  ;;  %vm280_vm4 = vcmask 0  }
  0x54   : > { %vm245_vm0 = vcmp.eq.s32.totalorder %v228_v13, 0  ;;  %vm252_vm1 = vcmp.eq.s32.totalorder %v228_v13, 1  ;;  %vm259_vm2 = vcmp.eq.s32.totalorder %v228_v13, 2 }
  0x55   : > { %v230_v4 = vmax.f32 %v229_v3, %v395_v2  ;;  %s789_s12 = smov (!%p217_p7, %s579_s12), 1 }
  0x56   : > { %s222_s4 = scalar_lea.vmem %s774_s2, %s789_s12 }
  0x57   : > { %v231_v5 = vsub.f32 %v223_v0, %v230_v4  ;;  %v232_v6 = vsub.f32 %v394_v1, %v230_v4  ;;  %v233_v7 = vsub.f32 %v395_v2, %v230_v4 }
  0x59   : > { %v234_v8 = vmul.f32 1.442695, %v231_v5  ;;  %v236_v9 = vmul.f32 1.442695, %v232_v6  ;;  %v238_v10 = vmul.f32 1.442695, %v233_v7 }
  0x5b   : > { %463 = vpow2.f32 %v234_v8 }
  0x5c   : > { %465 = vpow2.f32 %v236_v9 }
  0x5d   : > { %467 = vpow2.f32 %v238_v10 }
  0x65   : > { %v464_v11 = vpop.eup %463 }
  0x66   : > { %v466_v12 = vpop.eup %465  ;;  %v250_v17 = vsel %vm245_vm0, %v464_v11, 0.0 }
  0x67   : > { %v468_v14 = vpop.eup %467  ;;  %v240_v15 = vadd.f32 %v466_v12, %v464_v11  ;;  %v257_v18 = vsel %vm252_vm1, %v466_v12, 0.0 }
  0x68   : > { %v258_v19 = vadd.f32 %v257_v18, %v250_v17  ;;  %v264_v20 = vsel %vm259_vm2, %v468_v14, 0.0 }
  0x69   : > { %v241_v16 = vadd.f32 %v468_v14, %v240_v15 }
  0x6a   : > { %v265_v21 = vadd.f32 %v264_v20, %v258_v19 }
  0x6b   : > { %469 = vlog2.f32 %v241_v16 }
  0x6c   : > { %471 = vrcp.f32 %v241_v16 }
  0x75   : > { %v470_v22 = vpop.eup %469 }
  0x76   : > { %v472_v23 = vpop.eup %471  ;;  %v243_v24 = vmul.f32 0.6931472, %v470_v22 }
  0x77   : > { %v266_v25 = vmul.f32 %v472_v23, %v265_v21 }
  0x78   : > { %v246_v26 = vsub.f32 %v243_v24, %v231_v5  ;;  %v253_v27 = vsub.f32 %v243_v24, %v232_v6  ;;  %v260_v28 = vsub.f32 %v243_v24, %v233_v7 }
  0x79   : > { %v267_v29 = vsub.f32 1.0, %v266_v25 }
  0x7a   : > { %v247_v30 = vmul.f32 0.25, %v246_v26  ;;  %v254_v31 = vmul.f32 0.75, %v253_v27  ;;  %v261_v32 = vmul.f32 0.75, %v260_v28 }
  0x7b   : > { %v268_v37 = vmul.f32 %v267_v29, %v267_v29 }
  0x7c   : > { %v248_v33 = vsel %vm245_vm0, %v247_v30, 0.0  ;;  %v255_v34 = vsel %vm252_vm1, %v254_v31, 0.0  ;;  %v262_v35 = vsel %vm259_vm2, %v261_v32, 0.0 }
  0x7d   : > { %v256_v36 = vadd.f32 %v255_v34, %v248_v33 }
  0x7f   : > { %v263_v38 = vadd.f32 %v262_v35, %v256_v36 }
  0x81   : > { %v269_v39 = vmul.f32 %v268_v37, %v263_v38 }
  0x83   : > { %v271_v40 = vsel %vm270_vm3, %v269_v39, 0.0 }
  0x84   : > { %v272_v41 = vrot.slane %v271_v40, 4 }
  0x86   : > { %v273_v42 = vadd.f32 %v272_v41, %v271_v40 }
  0x88   : > { %v274_v43 = vrot.slane %v273_v42, 2 }
  0x8a   : > { %v275_v44 = vadd.f32 %v274_v43, %v273_v42 }
  0x8c   : > { %v276_v45 = vrot.slane %v275_v44, 1 }
  0x8e   : > { %v277_v46 = vadd.f32 %v276_v45, %v275_v44 }
  0x90   : > { %278 = vadd.xlane.f32.xlu0 %v277_v46 }
 0x11d   : > { %v279_v47 = vpop.xlane.xlu0 %278 }
 0x11e   : > { %281 = vst.msk [vmem:[%s222_s4] sm:$0x1] %vm280_vm4, %v279_v47 }
 0x11f PF: > { %s18_s14 = sadd.s32 1, %s587_s14   ;;  %s781_s9 = smov %s571_s10 }
 0x120   : > { %p15_p9 = scmp.ge.s32.totalorder %s18_s14, 4   ;;  %s782_s10 = smov %s575_s11 }
 0x121   : > { %s783_s11 = smov %s653_s20  ;;  %s784_s12 = smov %s583_s13 }
 0x122   : > { %s785_s13 = smov %s787_s16  ;;  %17 = sbr.rel (!%p15_p9) target bundleno = 6 (0x6), region = 83 }
 0x129   :  { %305 = vsyncpa [#allocation3], 1 }
 0x12a   :  { %307 = vsyncpa [#allocation3 + $0x1], 1 }
 0x12b   :  { %308 = vsyncpa [#allocation5], 1 }
 0x12c   :  { %310 = vsyncpa [#allocation5 + $0x1], 1 }

</bundles_post_ra>
